<compile_context>
chip_gen: v7x
topology: tpu7x:2x2x1
jax: 0.10.0
libtpu: 0.0.40
codegen_flags: <defaults>
</compile_context>

<pallas_src>
import jax
import jax.numpy as jnp
from jax.experimental import pallas as pl
from jax.experimental.pallas import tpu as pltpu


def _round_up(v, m):
    return (v + m - 1) // m * m


def _chip_vmem_budget():
    """Scoped-VMEM request per chip generation (conservative default)."""
    try:
        kind = jax.devices()[0].device_kind.lower()
    except Exception:
        kind = ""
    if ("v5" in kind) or ("v6" in kind):
        return 96 * 1024 * 1024      # 128 MiB physical VMEM
    return 48 * 1024 * 1024          # v7x has 64 MiB/TC -> stay conservative


def _pick_tm(n_pad, vmem_budget):
    """Largest A_hat row-tile that divides n_pad and keeps the double-buffered
    bf16 A tile (2 * tm * n_pad * 2 bytes) under ~60% of the VMEM budget."""
    cap = (vmem_budget * 6) // 10
    for tm in (512, 256, 128):
        if n_pad % tm == 0 and 4 * tm * n_pad <= cap:
            return tm
    return 128


# ---------------------------------------------------------------------------
# Kernel 1: row-tiled node transform  XW = X_tile @ W   (bf16 MXU, f32 accum).
# ---------------------------------------------------------------------------
def transform_kernel(x_ref, w_ref, out_ref):
    out_ref[...] = jnp.dot(
        x_ref[...], w_ref[...], preferred_element_type=jnp.float32
    ).astype(out_ref.dtype)


def transform(x, w, *, tm, vmem_limit):
    n_pad, f = x.shape
    c_out = w.shape[1]
    return pl.pallas_call(
        transform_kernel,
        out_shape=jax.ShapeDtypeStruct((n_pad, c_out), jnp.bfloat16),
        grid_spec=pltpu.PrefetchScalarGridSpec(
            num_scalar_prefetch=0,
            grid=(n_pad // tm,),
            in_specs=[
                pl.BlockSpec((tm, f), lambda i: (i, 0)),       # X row tile
                pl.BlockSpec((f, c_out), lambda i: (0, 0)),    # W (resident)
            ],
            out_specs=pl.BlockSpec((tm, c_out), lambda i: (i, 0)),
        ),
        compiler_params=pltpu.CompilerParams(
            dimension_semantics=("parallel",),
            vmem_limit_bytes=vmem_limit,
        ),
    )(x, w)


# ---------------------------------------------------------------------------
# Kernel 2: fused aggregate + next-layer transform.
#   out_tile = relu(A_tile @ R + b) @ W_next
# where R = H_{l-1} @ W_l is the grid-invariant resident operand and W_next is
# either the next layer's GCN weight or the folded (32, 2) classifier weight.
# ---------------------------------------------------------------------------
def gcn_agg_transform_kernel(a_ref, r_ref, b_ref, w_ref, out_ref):
    agg = jnp.dot(a_ref[...], r_ref[...], preferred_element_type=jnp.float32)
    h = jnp.maximum(agg + b_ref[...], 0.0)                    # bias + ReLU in f32
    out_ref[...] = jnp.dot(
        h.astype(jnp.bfloat16), w_ref[...], preferred_element_type=jnp.float32
    ).astype(out_ref.dtype)
    # TODO(synk): Dropout(p=0.5) is eval-mode identity; training mask not applied.


def gcn_agg_transform(a_hat, r, b, w_next, *, out_dtype, tm, vmem_limit):
    n_pad = a_hat.shape[0]
    c_mid = r.shape[1]
    c_out = w_next.shape[1]
    return pl.pallas_call(
        gcn_agg_transform_kernel,
        out_shape=jax.ShapeDtypeStruct((n_pad, c_out), out_dtype),
        grid_spec=pltpu.PrefetchScalarGridSpec(
            num_scalar_prefetch=0,
            grid=(n_pad // tm,),
            in_specs=[
                pl.BlockSpec((tm, n_pad), lambda i: (i, 0)),      # A_hat row tile
                pl.BlockSpec((n_pad, c_mid), lambda i: (0, 0)),   # R = H @ W_l
                pl.BlockSpec((1, c_mid), lambda i: (0, 0)),       # bias (f32)
                pl.BlockSpec((c_mid, c_out), lambda i: (0, 0)),   # W_next
            ],
            out_specs=pl.BlockSpec((tm, c_out), lambda i: (i, 0)),
        ),
        compiler_params=pltpu.CompilerParams(
            dimension_semantics=("parallel",),
            vmem_limit_bytes=vmem_limit,
        ),
    )(a_hat, r, b, w_next)


# ---------------------------------------------------------------------------
# Parameters and forward wrapper.
# ---------------------------------------------------------------------------
def make_params(num_features, key):
    ks = jax.random.split(key, 8)

    def lin(k, fan_in, fan_out):
        return (jax.random.normal(k, (fan_in, fan_out), jnp.float32)
                * (1.0 / jnp.sqrt(jnp.float32(fan_in))))

    return {
        "w1": lin(ks[0], num_features, 128), "b1": jnp.zeros((1, 128), jnp.float32),
        "w2": lin(ks[1], 128, 64),           "b2": jnp.zeros((1, 64), jnp.float32),
        "w3": lin(ks[2], 64, 32),            "b3": jnp.zeros((1, 32), jnp.float32),
        "wc": lin(ks[3], 64, 1),             # classifier Linear(2*32, 1)
        "bc": jax.random.normal(ks[4], (1, 1), jnp.float32) * 0.01,
    }


def arxiv_reco_forward(x, edge_index, params):
    """x: (N, F) float32, edge_index: (2, E) int32 -> (E, 1) float32 logits."""
    N, F = x.shape
    E = edge_index.shape[1]
    N_pad = _round_up(max(N, 8), 128)

    src = edge_index[0].astype(jnp.int32)
    dst = edge_index[1].astype(jnp.int32)

    # PyG GCNConv normalization: add self loops, degree over targets,
    # A_hat[j, i] = d_j^{-1/2} * d_i^{-1/2} for edge i -> j (and i == j).
    a = jnp.zeros((N, N), jnp.float32).at[dst, src].add(1.0)
    a = a + jnp.eye(N, dtype=jnp.float32)
    deg = jnp.sum(a, axis=1)
    dinv = jnp.where(deg > 0, jax.lax.rsqrt(deg), 0.0)
    a_hat = dinv[:, None] * a * dinv[None, :]
    a_hat = (jnp.zeros((N_pad, N_pad), jnp.float32)
             .at[:N, :N].set(a_hat).astype(jnp.bfloat16))
    # TODO(synk): dense O(N^2) adjacency; real ogbn-arxiv scale needs a sparse SpMM path.

    # Channel dims stay unpadded (full-array-dim blocks are legal); only the
    # node dim is padded to the tile grid. Padded rows of intermediates carry
    # relu(bias)-derived values but A_hat's padded columns are zero and the
    # edge gather only touches indices < N, so they never contribute.
    x_p = (jnp.zeros((N_pad, F), jnp.float32)
           .at[:N, :].set(x.astype(jnp.float32)).astype(jnp.bfloat16))

    w1 = params["w1"].astype(jnp.bfloat16)
    w2 = params["w2"].astype(jnp.bfloat16)
    w3 = params["w3"].astype(jnp.bfloat16)
    h3 = params["w3"].shape[1]
    # Fold Linear(2*32, 1): column 0 = start-half weights, column 1 = end-half.
    wc = jnp.concatenate([params["wc"][:h3], params["wc"][h3:]], axis=1)
    wc = wc.astype(jnp.bfloat16)                                   # (32, 2)
    b1, b2, b3 = params["b1"], params["b2"], params["b3"]

    vmem_limit = _chip_vmem_budget()
    tm = _pick_tm(N_pad, vmem_limit)

    # Layer-1 node transform (row-tiled): XW1 = X @ W1.
    xw1 = transform(x_p, w1, tm=tm, vmem_limit=vmem_limit)            # (N_pad, 128)
    # Layer-1 aggregate fused with layer-2 transform: relu(A@XW1 + b1) @ W2.
    h1w2 = gcn_agg_transform(a_hat, xw1, b1, w2,
                             out_dtype=jnp.bfloat16, tm=tm,
                             vmem_limit=vmem_limit)                   # (N_pad, 64)
    # Layer-2 aggregate fused with layer-3 transform: relu(A@H1W2 + b2) @ W3.
    h2w3 = gcn_agg_transform(a_hat, h1w2, b2, w3,
                             out_dtype=jnp.bfloat16, tm=tm,
                             vmem_limit=vmem_limit)                   # (N_pad, 32)
    # Layer-3 aggregate fused with the classifier's per-node scores (hoisted
    # out of any per-edge loop): scores = relu(A@H2W3 + b3) @ [Wc_s | Wc_e].
    scores = gcn_agg_transform(a_hat, h2w3, b3, wc,
                               out_dtype=jnp.float32, tm=tm,
                               vmem_limit=vmem_limit)                 # (N_pad, 2)

    # Edge classifier: true O(E) gather (no one-hot, VMEM-flat), per review.
    v_s = scores[:, 0]
    v_e = scores[:, 1]
    logits = v_s[src] + v_e[dst] + params["bc"].reshape(())
    return logits.reshape(E, 1)


if __name__ == "__main__":
    key = jax.random.PRNGKey(0)
    k_x, k_e, k_p = jax.random.split(key, 3)

    N = 64   # number of nodes
    F = 32   # num_features
    E = 96   # number of edges

    x = jax.random.normal(k_x, (N, F), jnp.float32)
    edge_index = jax.random.randint(k_e, (2, E), 0, N, dtype=jnp.int32)

    params = make_params(F, k_p)

    out = arxiv_reco_forward(x, edge_index, params)
    out = jax.block_until_ready(out)
    assert out.shape == (E, 1)
    print("KERNEL_OK")
</pallas_src>

<mosaic_0001>
module attributes {stable_mosaic.version = 11 : i64} {
  func.func @transform_kernel(%arg0: i32, %arg1: memref<128x32xbf16, #tpu.memory_space<vmem>>, %arg2: memref<32x128xbf16, #tpu.memory_space<vmem>>, %arg3: memref<128x128xbf16, #tpu.memory_space<vmem>>) attributes {dimension_semantics = [#tpu.dimension_semantics<parallel>], iteration_bounds = array<i64: 1>, scalar_prefetch = 0 : i64, scratch_operands = 0 : i64, tpu.core_type = #tpu.core_type<tc>, window_params = [{transform_indices = @transform_0, window_bounds = array<i64: 128, 32>}, {pipeline_mode = #tpu.pipeline_mode<synchronous>, transform_indices = @transform_1, window_bounds = array<i64: 32, 128>}, {transform_indices = @transform_2, window_bounds = array<i64: 128, 128>}]} {
    %c0 = arith.constant 0 : index
    %c0_0 = arith.constant 0 : index
    %0 = vector.load %arg1[%c0, %c0_0] : memref<128x32xbf16, #tpu.memory_space<vmem>>, vector<128x32xbf16>
    %c0_1 = arith.constant 0 : index
    %c0_2 = arith.constant 0 : index
    %1 = vector.load %arg2[%c0_1, %c0_2] : memref<32x128xbf16, #tpu.memory_space<vmem>>, vector<32x128xbf16>
    %cst = arith.constant dense<0.000000e+00> : vector<128x128xf32>
    %2 = tpu.matmul %0, %1, %cst {dimension_numbers = #tpu.dot_dimension_numbers<[1], [0], [0], [1], [0, 0, 1, 1], [], []>} : vector<128x32xbf16>, vector<32x128xbf16>, vector<128x128xf32> -> vector<128x128xf32>
    %3 = arith.truncf %2 : vector<128x128xf32> to vector<128x128xbf16>
    %c0_3 = arith.constant 0 : index
    %c0_4 = arith.constant 0 : index
    %4 = vector.load %arg3[%c0_3, %c0_4] : memref<128x128xbf16, #tpu.memory_space<vmem>>, vector<128x128xbf16>
    tpu.vector_store %arg3[%c0_3, %c0_4], %3 {strides = array<i32>} : memref<128x128xbf16, #tpu.memory_space<vmem>>, vector<128x128xbf16>,
    return
  }
  func.func @transform_0(%arg0: i32) -> (i32, i32) {
    %c0_i32 = arith.constant 0 : i32
    %c0_i32_0 = arith.constant 0 : i32
    return %arg0, %c0_i32 : i32, i32
  }
  func.func @transform_1(%arg0: i32) -> (i32, i32) {
    %c0_i32 = arith.constant 0 : i32
    %c0_i32_0 = arith.constant 0 : i32
    %c0_i32_1 = arith.constant 0 : i32
    return %c0_i32, %c0_i32_0 : i32, i32
  }
  func.func @transform_2(%arg0: i32) -> (i32, i32) {
    %c0_i32 = arith.constant 0 : i32
    %c0_i32_0 = arith.constant 0 : i32
    return %arg0, %c0_i32 : i32, i32
  }
}

</mosaic_0001>

<bundles_post_ra>
// kernel: tpu_custom_call.1
= control target key start
LH: loop header
LB: loop body
LE: loop exit
PB: predicated region body
PF: predicated region fallthrough
CT: control target
= control target key end

     0   :  { %vm85_vm0 = vcmask 261120   ;;  %s539_s0 = inlined_call_operand.vmem [shape: bf16[128,32], index: 0, kind: input, shape index: {}]   ;;  %s540_s1 = inlined_call_operand.vmem [shape: bf16[32,128], index: 1, kind: input, shape index: {}]   ;;  %s541_s2 = inlined_call_operand.hbm [shape: bf16[128,128], index: 2, kind: output, shape index: {}]  }
   0x1   :  { %v437_v0 = vld [vmem:[%s540_s1] sm:$0xff]   ;;  %v438_v1 = vld [vmem:[%s540_s1 + $0x8] sm:$0xff]   ;;  %v443_v6 = vld [vmem:[%s539_s0 + $0x10] sm:$0xff]  }
   0x2   :  { %410 = vmatprep.subr.bf16.mxu0 %v437_v0  ;;  %430 = vmatprep.subr.bf16.mxu1 %v437_v0  ;;  %v439_v2 = vld [vmem:[%s539_s0] sm:$0xff]   ;;  %v441_v4 = vld [vmem:[%s539_s0 + $0x8] sm:$0xff]   ;;  %v444_v7 = vld [vmem:[%s539_s0 + $0x30] sm:$0xff]  }
   0x3   :  { %411 = vmatpush3.bf16.msra.mxu0 %v437_v0  ;;  %432 = vmatpush3.bf16.msra.mxu1 %v437_v0  ;;  %v440_v3 = vld [vmem:[%s539_s0 + $0x20] sm:$0xff]   ;;  %v442_v5 = vld [vmem:[%s539_s0 + $0x28] sm:$0xff]  }
   0x4   :  { %412 = vmatprep.subr.bf16.mxu0 %v438_v1  ;;  %431 = vmatprep.subr.bf16.mxu1 %v438_v1 }
   0x5   :  { %414 = vmatprep.mubr.msk.bf16.mxu0 %vm85_vm0, %v439_v2  ;;  %422 = vmatprep.mubr.msk.bf16.mxu1 %vm85_vm0, %v440_v3 }
   0x7   :  { %413 = vmatpush3.bf16.msra.mxu0 %v438_v1  ;;  %433 = vmatpush3.bf16.msra.mxu1 %v438_v1 }
   0xa   :  { %415 = vmatmul.mubr.msk.bf16.vlgmr.msra.gmra.mrb[0].mxu0 %vm85_vm0, %v441_v4  ;;  %423 = vmatmul.mubr.msk.bf16.vlgmr.msra.gmra.mrb[0].mxu1 %vm85_vm0, %v442_v5 }
   0xb   :  { %7 = vsyncpa [#allocation3], 0  ;;  %418 = vmatprep.mubr.msk.bf16.mxu0 %vm85_vm0, %v443_v6  ;;  %426 = vmatprep.mubr.msk.bf16.mxu1 %vm85_vm0, %v444_v7  ;;  %v445_v8 = vld [vmem:[%s539_s0 + $0x18] sm:$0xff]  }
   0xc   :  { %v446_v9 = vld [vmem:[%s539_s0 + $0x38] sm:$0xff]   ;;  %s471_s0 = smov [#allocation2]  }
   0xd   :  { %s292_s28 = sshll.u32 %s471_s0, 4  ;;  %s293_s28 = int_to_ptr.vmem [resolvable:$true] %s292_s28 }
   0xe   :  { %s447_s29 = scalar_lea.vmem %s293_s28, 1024  ;;  %p452_p1 = scmp.lt.s32.totalorder %s293_s28, %s293_s28 }
   0xf   :  { %p448_p0 = scmp.ne.s32.totalorder %s293_s28, %s447_s29  ;;  %p453_p2 = scmp.lt.s32.totalorder %s447_s29, %s447_s29 }
  0x11   :  { %p454_p3 = por %p453_p2, %p452_p1 }
  0x12   :  { %419 = vmatmul.mubr.msk.bf16.gmra.mrb[4].mxu0 %vm85_vm0, %v445_v8  ;;  %427 = vmatmul.mubr.msk.bf16.gmra.mrb[4].mxu1 %vm85_vm0, %v446_v9 }
  0x13   :  { %p455_p4 = pnand %p454_p3, %p448_p0 }
  0xdd   :  { %v416_v10 = vpop.f32.mrb[0].mxu0  ;;  %v424_v11 = vpop.f32.mrb[0].mxu1 }
  0xde   :  { %v144_v12 = vpop.f32.mrb[1].mxu0  ;;  %v176_v13 = vpop.f32.mrb[1].mxu1 }
  0xdf   :  { %v417_v14 = vpop.f32.mrb[2].mxu0  ;;  %v425_v15 = vpop.f32.mrb[2].mxu1 }
  0xe0   :  { %v361_v16 = vpack.c.bf16 %v417_v14, %v416_v10  ;;  %v381_v17 = vpack.c.bf16 %v425_v15, %v424_v11  ;;  %v147_v18 = vpop.f32.mrb[3].mxu0  ;;  %v179_v19 = vpop.f32.mrb[3].mxu1 }
  0xe1   :  { %v356_v20 = vpack.c.bf16 %v147_v18, %v144_v12  ;;  %v376_v21 = vpack.c.bf16 %v179_v19, %v176_v13 }
  0xe2   :  { %393 = vst [vmem:[#allocation2 + $0x8] sm:$0xff] %v361_v16   ;;  %397 = vst [vmem:[#allocation2 + $0x28] sm:$0xff] %v381_v17  }
  0xe3   :  { %357 = vst [vmem:[#allocation2] sm:$0xff] %v356_v20   ;;  %396 = vst [vmem:[#allocation2 + $0x20] sm:$0xff] %v376_v21  }
  0xe5   :  { %v420_v22 = vpop.f32.mrb[4].mxu0  ;;  %v428_v23 = vpop.f32.mrb[4].mxu1 }
  0xe6   :  { %v160_v24 = vpop.f32.mrb[5].mxu0  ;;  %v192_v25 = vpop.f32.mrb[5].mxu1 }
  0xe7   :  { %v421_v26 = vpop.f32.mrb[6].mxu0  ;;  %v429_v27 = vpop.f32.mrb[6].mxu1 }
  0xe8   :  { %v371_v28 = vpack.c.bf16 %v421_v26, %v420_v22  ;;  %v391_v29 = vpack.c.bf16 %v429_v27, %v428_v23  ;;  %v163_v30 = vpop.f32.mrb[7].mxu0  ;;  %v195_v31 = vpop.f32.mrb[7].mxu1 }
  0xe9   :  { %v366_v32 = vpack.c.bf16 %v163_v30, %v160_v24  ;;  %v386_v33 = vpack.c.bf16 %v195_v31, %v192_v25 }
  0xea   :  { %395 = vst [vmem:[#allocation2 + $0x18] sm:$0xff] %v371_v28   ;;  %399 = vst [vmem:[#allocation2 + $0x38] sm:$0xff] %v391_v29  }
  0xeb   :  { %394 = vst [vmem:[#allocation2 + $0x10] sm:$0xff] %v366_v32   ;;  %398 = vst [vmem:[#allocation2 + $0x30] sm:$0xff] %v386_v33  }
  0xec   :  { %458 = shalt.err (!%p455_p4)
}
  0xed   :  { %s459_s4 = scalar_lea.hbm %s541_s2, 1024 }
  0xee   :  { %p460_p5 = scmp.ne.s32.totalorder %s541_s2, %s459_s4  ;;  %p463_p6 = scmp.lt.u32.totalorder %s459_s4, %s541_s2 }
  0xf0   :  { %p465_p7 = pnand %p463_p6, %p460_p5 }
  0xf2   :  { %468 = shalt.err (!%p465_p7)
}
  0xf3   :  { %s472_s9 = smov 64   ;;  %s473_s10 = smov 4  }
  0xf4   :  { %298 = dma.vmem_to_hbm [thread:$0]  %s293_s28, 1024, %s541_s2, [#allocation3], %s472_s9, %s472_s9, %s473_s10  }
  0xf5   :  { %469 = dma.done.wait [#allocation3], 1024  }
  0xf6   :  { %470 = vsyncadd [#allocation3], 4294966272 }
  0xf7   :  { %302 = vsyncpa [#allocation3], 1 }

</bundles_post_ra>
